<compile_context>
chip_gen: v6e
topology: v6e:2x2x1
jax: 0.10.0
libtpu: 0.0.40
codegen_flags: <defaults>
</compile_context>

<pallas_src>
import math

import jax
import jax.numpy as jnp
from jax.experimental import pallas as pl
from jax.experimental.pallas import tpu as pltpu


# ----------------------------------------------------------------------------
# Small helpers
# ----------------------------------------------------------------------------
def xavier_uniform(key, shape, dtype=jnp.float32):
    """Deterministic xavier-uniform-like init (matches torch's scale for 2-D)."""
    fan_in, fan_out = shape[-2], shape[-1]
    bound = math.sqrt(6.0 / (fan_in + fan_out))
    return jax.random.uniform(key, shape, dtype, minval=-bound, maxval=bound)


def _cdiv(a, b):
    return -(-a // b)


def _round_up(x, m):
    return _cdiv(x, m) * m


def _split_axis(n, cap, mult, min_tiles=1):
    """Split an axis of size n into tiles.

    Picks the tile COUNT first (>= min_tiles, respecting the size cap), then a
    tile size that is a multiple of `mult`, so the padded extent stays close to
    n instead of being rounded up to a full cap multiple.

    Returns (tile, n_tiles, padded_extent) with padded_extent = tile * n_tiles.
    """
    max_tiles = max(1, _cdiv(n, mult))
    n_tiles = min(max(min_tiles, _cdiv(n, cap)), max_tiles)
    tile = _round_up(_cdiv(n, n_tiles), mult)
    return tile, n_tiles, n_tiles * tile


# ----------------------------------------------------------------------------
# Adjacency preprocessing (hoist / cache this across layers and steps)
# ----------------------------------------------------------------------------
def prepare_adjacency(A_dense, *, tm_max=1024, tk_max=2048, a_dtype=jnp.bfloat16):
    """Pad + cast the dense adjacency once.

    A_dense : (R, N, N) dense adjacency per relation with 0/1 entries.
    Returns a dict consumed by rgcn_layer_forward.  Doing this once (instead of
    inside every forward call) removes an f32-read + narrow-write of the full
    adjacency from the per-layer critical path.
    """
    R, N, N2 = A_dense.shape
    assert N == N2, "adjacency must be square per relation"
    # Packed sublane multiple of the storage dtype: 16 for bf16, 32 for 1-byte.
    sub_mult = 32 if jnp.dtype(a_dtype).itemsize == 1 else 16
    # >=2 row tiles so the leading "parallel" axis uses both TCs on v7x.
    tm, _, Nm = _split_axis(N, tm_max, sub_mult, min_tiles=2)
    tk, _, Nk = _split_axis(N, tk_max, 128, min_tiles=1)
    A_p = jnp.zeros((R, Nm, Nk), a_dtype).at[:, :N, :N].set(A_dense.astype(a_dtype))
    return {"A": A_p, "N": N, "tm": tm, "tk": tk}


# ----------------------------------------------------------------------------
# Kernel
# ----------------------------------------------------------------------------
def _rgcn_kernel(a_ref, xwh_ref, xwl_ref, o_ref):
    """grid = (i: dst-node row tile [parallel],
               j: output col tile   [parallel],
               r: relation          [reduction],
               k: src-node col tile [reduction])

    a_ref  : (tm, tk) bf16/int8 tile of A[r]        (relation dim squeezed)
    xwh_ref: (tk, to) bf16      hi half of X @ W[r] (relation dim squeezed)
    xwl_ref: (tk, to) bf16      lo half of X @ W[r]
    o_ref  : (tm, to) f32       resident output tile (accumulated in place)
    """
    r = pl.program_id(2)
    k = pl.program_id(3)

    # Zero the resident output tile at the start of its reduction loop.
    @pl.when((r == 0) & (k == 0))
    def _():
        o_ref[...] = jnp.zeros_like(o_ref)

    # bf16 A is exact for 0/1 entries; if A was stored int8 this is a VPU cast.
    a = a_ref[...].astype(jnp.bfloat16)

    # Two native bf16 MXU matmuls (hi/lo split of the f32 XW), f32 accumulation.
    acc = jnp.dot(a, xwh_ref[...], preferred_element_type=jnp.float32)
    acc += jnp.dot(a, xwl_ref[...], preferred_element_type=jnp.float32)
    o_ref[...] += acc


# ----------------------------------------------------------------------------
# Forward wrapper
# ----------------------------------------------------------------------------
def rgcn_layer_forward(A, X, w_rel, w_bases, bias=None, *,
                       tm_max=1024, tk_max=2048, to_max=512,
                       a_dtype=jnp.bfloat16):
    """Pallas implementation of RelationalGraphConvLayer.forward.

    A       : either (R, N, N) dense 0/1 adjacency, or the dict returned by
              prepare_adjacency (preferred: hoists the pad+cast out of this call)
    X       : (N, I)    node features
    w_rel   : (R, B)    basis coefficients
    w_bases : (B, I, O) basis weight matrices
    bias    : optional (O,)
    returns : (N, O)    float32
    """
    if not isinstance(A, dict):
        # TODO(synk): callers should hoist this (prepare_adjacency) out of the
        # per-layer / per-step path; it costs ~3x the kernel's own A bytes.
        A = prepare_adjacency(A, tm_max=tm_max, tk_max=tk_max, a_dtype=a_dtype)
    A_p, N, tm, tk = A["A"], A["N"], A["tm"], A["tk"]
    R, Nm, Nk = A_p.shape
    O = w_bases.shape[-1]

    # Glue (tiny vs. the A matmuls): basis decomposition + re-association, kept
    # at true f32 precision so the kernel-side hi/lo split is the only rounding.
    hi = jax.lax.Precision.HIGHEST
    W = jnp.einsum("rb,bio->rio", w_rel.astype(jnp.float32),
                   w_bases.astype(jnp.float32), precision=hi)          # (R, I, O)
    XW = jnp.einsum("ni,rio->rno", X.astype(jnp.float32), W,
                    precision=hi)                                       # (R, N, O)

    # Lane-dense output-column tiling (bounds VMEM on v7x for large O).
    to, _, Op = _split_axis(O, to_max, 128, min_tiles=1)

    # Zero-pad XW: extra A columns hit zero XW rows (no contribution); padded
    # output rows/cols are sliced off below.
    XW_p = jnp.zeros((R, Nk, Op), jnp.float32).at[:, :N, :O].set(XW)
    XW_hi = XW_p.astype(jnp.bfloat16)
    XW_lo = (XW_p - XW_hi.astype(jnp.float32)).astype(jnp.bfloat16)

    grid = (Nm // tm, Op // to, R, Nk // tk)

    out = pl.pallas_call(
        _rgcn_kernel,
        out_shape=jax.ShapeDtypeStruct((Nm, Op), jnp.float32),
        grid_spec=pltpu.PrefetchScalarGridSpec(
            num_scalar_prefetch=0,
            grid=grid,
            in_specs=[
                # A[r] row/col tile; relation dim squeezed out of the kernel view.
                pl.BlockSpec((pl.Squeezed(), tm, tk), lambda i, j, r, k: (r, i, k)),
                # hi / lo bf16 halves of (X @ W[r]); reduction tile x output tile.
                pl.BlockSpec((pl.Squeezed(), tk, to), lambda i, j, r, k: (r, k, j)),
                pl.BlockSpec((pl.Squeezed(), tk, to), lambda i, j, r, k: (r, k, j)),
            ],
            # Output tile resident across (r, k); accumulated in place.
            out_specs=pl.BlockSpec((tm, to), lambda i, j, r, k: (i, j)),
        ),
        compiler_params=pltpu.CompilerParams(
            # row / output-col tiles parallel (megacore / v7x 2nd TC),
            # relation + src-col reductions arbitrary.
            dimension_semantics=("parallel", "parallel", "arbitrary", "arbitrary"),
        ),
    )(A_p, XW_hi, XW_lo)

    out = out[:N, :O]
    if bias is not None:
        out = out + bias[None, :]
    return out


# ----------------------------------------------------------------------------
# Plain-JAX reference (matches the PyTorch forward, true f32 precision)
# ----------------------------------------------------------------------------
def rgcn_reference(A_dense, X, w_rel, w_bases, bias=None):
    hi = jax.lax.Precision.HIGHEST
    W = jnp.einsum("rb,bio->rio", w_rel, w_bases, precision=hi)
    R, I, O = W.shape
    weights = W.reshape(R * I, O)
    supports = [jnp.dot(A_dense[r], X, precision=hi) for r in range(R)]  # (N, I) each
    tmp = jnp.concatenate(supports, axis=1)                              # (N, R*I)
    out = jnp.dot(tmp.astype(jnp.float32), weights, precision=hi)        # (N, O)
    if bias is not None:
        out = out + bias[None, :]
    return out


if __name__ == "__main__":
    # Small shapes consistent with the module's forward.  N is deliberately not
    # a multiple of the tile sizes so padding + the multi-tile fused reduction
    # (relations x src-col tiles) is exercised.
    num_nodes = 192      # N
    input_size = 32      # I
    output_size = 32     # O
    num_rel = 3          # R
    num_bases = 2        # B

    key = jax.random.PRNGKey(0)
    k_a, k_x, k_wb, k_wr = jax.random.split(key, 4)

    # Dense adjacency per relation (sparse-ish binary pattern).
    A_dense = (
        jax.random.uniform(k_a, (num_rel, num_nodes, num_nodes)) < 0.15
    ).astype(jnp.float32)

    # Node features.
    X = jax.random.normal(k_x, (num_nodes, input_size), dtype=jnp.float32)

    # Parameters (deterministic xavier-uniform init; shapes from __init__).
    w_bases = xavier_uniform(k_wb, (num_bases, input_size, output_size))
    w_rel = xavier_uniform(k_wr, (num_rel, num_bases))
    # bias=False is the module default -> no bias parameter.

    # Hoisted adjacency prep (cache/reuse across layers in real use).  Small
    # tile caps so the toy problem exercises a (3, 1, R, 2) grid; production
    # calls use the defaults (tm_max=1024, tk_max=2048, to_max=512).
    A_prep = prepare_adjacency(A_dense, tm_max=64, tk_max=128)

    out = rgcn_layer_forward(A_prep, X, w_rel, w_bases, to_max=128)
    out = jax.block_until_ready(out)

    ref = rgcn_reference(A_dense, X, w_rel, w_bases)
    assert out.shape == (num_nodes, output_size)
    assert out.dtype == jnp.float32
    assert jnp.allclose(out, ref, atol=1e-4, rtol=1e-4), "mismatch vs reference"

    print("KERNEL_OK")
</pallas_src>

<mosaic_0001>
module attributes {stable_mosaic.version = 11 : i64} {
  func.func @_rgcn_kernel(%arg0: i32, %arg1: i32, %arg2: i32, %arg3: i32, %arg4: memref<1x64x128xbf16, #tpu.memory_space<vmem>>, %arg5: memref<1x128x128xbf16, #tpu.memory_space<vmem>>, %arg6: memref<1x128x128xbf16, #tpu.memory_space<vmem>>, %arg7: memref<64x128xf32, #tpu.memory_space<vmem>>) attributes {dimension_semantics = [#tpu.dimension_semantics<parallel>, #tpu.dimension_semantics<parallel>, #tpu.dimension_semantics<arbitrary>, #tpu.dimension_semantics<arbitrary>], iteration_bounds = array<i64: 3, 1, 3, 2>, scalar_prefetch = 0 : i64, scratch_operands = 0 : i64, tpu.core_type = #tpu.core_type<tc>, window_params = [{transform_indices = @transform_0, window_bounds = array<i64: 1, 64, 128>}, {transform_indices = @transform_1, window_bounds = array<i64: 1, 128, 128>}, {transform_indices = @transform_2, window_bounds = array<i64: 1, 128, 128>}, {transform_indices = @transform_3, window_bounds = array<i64: 64, 128>}]} {
    %c0_i32 = arith.constant 0 : i32
    %0 = arith.cmpi eq, %arg2, %c0_i32 : i32
    %c0_i32_0 = arith.constant 0 : i32
    %1 = arith.cmpi eq, %arg3, %c0_i32_0 : i32
    %2 = arith.andi %0, %1 : i1
    %3 = arith.extui %2 : i1 to i32
    %c0_i32_1 = arith.constant 0 : i32
    %4 = arith.cmpi ne, %3, %c0_i32_1 : i32
    scf.if %4 {
      %cst_15 = arith.constant 0.000000e+00 : f32
      %17 = vector.broadcast %cst_15 : f32 to vector<64x128xf32>
      %c0_16 = arith.constant 0 : index
      %c0_17 = arith.constant 0 : index
      %18 = vector.load %arg7[%c0_16, %c0_17] : memref<64x128xf32, #tpu.memory_space<vmem>>, vector<64x128xf32>
      tpu.vector_store %arg7[%c0_16, %c0_17], %17 {strides = array<i32>} : memref<64x128xf32, #tpu.memory_space<vmem>>, vector<64x128xf32>,
    } else {
    }
    %c0 = arith.constant 0 : index
    %c0_2 = arith.constant 0 : index
    %c0_3 = arith.constant 0 : index
    %5 = vector.load %arg4[%c0, %c0_2, %c0_3] : memref<1x64x128xbf16, #tpu.memory_space<vmem>>, vector<1x64x128xbf16>
    %6 = vector.shape_cast %5 : vector<1x64x128xbf16> to vector<64x128xbf16>
    %c0_4 = arith.constant 0 : index
    %c0_5 = arith.constant 0 : index
    %c0_6 = arith.constant 0 : index
    %7 = vector.load %arg5[%c0_4, %c0_5, %c0_6] : memref<1x128x128xbf16, #tpu.memory_space<vmem>>, vector<1x128x128xbf16>
    %8 = vector.shape_cast %7 : vector<1x128x128xbf16> to vector<128x128xbf16>
    %cst = arith.constant dense<0.000000e+00> : vector<64x128xf32>
    %9 = tpu.matmul %6, %8, %cst {dimension_numbers = #tpu.dot_dimension_numbers<[1], [0], [0], [1], [0, 0, 1, 1], [], []>} : vector<64x128xbf16>, vector<128x128xbf16>, vector<64x128xf32> -> vector<64x128xf32>
    %c0_7 = arith.constant 0 : index
    %c0_8 = arith.constant 0 : index
    %c0_9 = arith.constant 0 : index
    %10 = vector.load %arg6[%c0_7, %c0_8, %c0_9] : memref<1x128x128xbf16, #tpu.memory_space<vmem>>, vector<1x128x128xbf16>
    %11 = vector.shape_cast %10 : vector<1x128x128xbf16> to vector<128x128xbf16>
    %cst_10 = arith.constant dense<0.000000e+00> : vector<64x128xf32>
    %12 = tpu.matmul %6, %11, %cst_10 {dimension_numbers = #tpu.dot_dimension_numbers<[1], [0], [0], [1], [0, 0, 1, 1], [], []>} : vector<64x128xbf16>, vector<128x128xbf16>, vector<64x128xf32> -> vector<64x128xf32>
    %13 = arith.addf %9, %12 : vector<64x128xf32>
    %c0_11 = arith.constant 0 : index
    %c0_12 = arith.constant 0 : index
    %14 = vector.load %arg7[%c0_11, %c0_12] : memref<64x128xf32, #tpu.memory_space<vmem>>, vector<64x128xf32>
    %15 = arith.addf %14, %13 : vector<64x128xf32>
    %c0_13 = arith.constant 0 : index
    %c0_14 = arith.constant 0 : index
    %16 = vector.load %arg7[%c0_13, %c0_14] : memref<64x128xf32, #tpu.memory_space<vmem>>, vector<64x128xf32>
    tpu.vector_store %arg7[%c0_13, %c0_14], %15 {strides = array<i32>} : memref<64x128xf32, #tpu.memory_space<vmem>>, vector<64x128xf32>,
    return
  }
  func.func @transform_0(%arg0: i32, %arg1: i32, %arg2: i32, %arg3: i32) -> (i32, i32, i32) {
    %c0_i32 = arith.constant 0 : i32
    return %arg2, %arg0, %arg3 : i32, i32, i32
  }
  func.func @transform_1(%arg0: i32, %arg1: i32, %arg2: i32, %arg3: i32) -> (i32, i32, i32) {
    %c0_i32 = arith.constant 0 : i32
    return %arg2, %arg3, %arg1 : i32, i32, i32
  }
  func.func @transform_2(%arg0: i32, %arg1: i32, %arg2: i32, %arg3: i32) -> (i32, i32, i32) {
    %c0_i32 = arith.constant 0 : i32
    return %arg2, %arg3, %arg1 : i32, i32, i32
  }
  func.func @transform_3(%arg0: i32, %arg1: i32, %arg2: i32, %arg3: i32) -> (i32, i32) {
    %c0_i32 = arith.constant 0 : i32
    return %arg0, %arg1 : i32, i32
  }
}

</mosaic_0001>

<bundles_post_ra>
// kernel: tpu_custom_call.1
= control target key start
LH: loop header
LB: loop body
LE: loop exit
PB: predicated region body
PF: predicated region fallthrough
CT: control target
= control target key end

     0   :  { %s1808_s0 = inlined_call_operand.hbm [shape: bf16[3,192,256], index: 0, kind: input, shape index: {}]   ;;  %s1809_s1 = inlined_call_operand.hbm [shape: bf16[3,256,128], index: 1, kind: input, shape index: {}]   ;;  %s1810_s2 = inlined_call_operand.hbm [shape: bf16[3,256,128], index: 2, kind: input, shape index: {}]   ;;  %s1811_s3 = inlined_call_operand.hbm [shape: f32[192,128], index: 3, kind: output, shape index: {}]  }
   0x1   :  { %1836 = sst [smem:[#allocation27_spill]] %s1808_s0 }
   0x2   :  { %1837 = sst [smem:[#allocation28_spill]] %s1809_s1 }
   0x3   :  { %1838 = sst [smem:[#allocation29_spill]] %s1810_s2 }
   0x4   :  { %1839 = sst [smem:[#allocation30_spill]] %s1811_s3 }
   0x5   :  { %8 = vsyncpa [#allocation3], 0 }
   0x6   :  { %10 = vsyncpa [#allocation3 + $0x1], 0 }
   0x7   :  { %11 = vsyncpa [#allocation6], 0 }
   0x8   :  { %13 = vsyncpa [#allocation6 + $0x1], 0 }
   0x9   :  { %14 = vsyncpa [#allocation4], 0 }
   0xa   :  { %16 = vsyncpa [#allocation4 + $0x1], 0  ;;  %s1393_s12 = smov 0   ;;  %s1395_s13 = smov 0  }
   0xb   :  { %s1397_s14 = smov 0   ;;  %s1399_s15 = smov 0  }
   0xc   :  { %s1401_s16 = smov 0   ;;  %s1403_s17 = smov 0  }
   0xd   :  { %s1405_s18 = smov 0   ;;  %s1407_s19 = smov 0  }
   0xe   :  { %s1409_s20 = smov 0   ;;  %s1411_s21 = smov 0  }
   0xf   :  { %s1413_s22 = smov 0   ;;  %s1415_s23 = smov 0  }
  0x10   :  { %s1417_s24 = smov 0   ;;  %s1419_s25 = smov 0  }
  0x11   :  { %s1421_s26 = smov 0   ;;  %s1423_s27 = smov 0  }
  0x12 LB: > { %1840 = sst [smem:[#allocation12_spill]] %s1301_s12  ;;  %s1474_s28 = sadd.s32 4294967295, %s1361_s27   ;;  %s1361_s27 = sphi %s1423_s27, %s22_s27   ;;  %s1357_s26 = sphi %s1421_s26, %s1908_s26   ;;  %s1353_s25 = sphi %s1419_s25, %s1907_s25   ;;  %s1349_s24 = sphi %s1417_s24, %s1906_s24   ;;  %s1345_s23 = sphi %s1415_s23, %s1905_s23   ;;  %s1341_s22 = sphi %s1413_s22, %s1904_s22   ;;  %s1337_s21 = sphi %s1411_s21, %s1903_s21   ;;  %s1333_s20 = sphi %s1409_s20, %s1902_s20   ;;  %s1329_s19 = sphi %s1407_s19, %s1901_s19   ;;  %s1325_s18 = sphi %s1405_s18, %s1900_s18   ;;  %s1321_s17 = sphi %s1403_s17, %s1892_s17   ;;  %s1317_s16 = sphi %s1401_s16, %s1891_s16   ;;  %s1313_s15 = sphi %s1399_s15, %s1899_s15   ;;  %s1309_s14 = sphi %s1397_s14, %s1898_s14   ;;  %s1305_s13 = sphi %s1395_s13, %s1897_s13   ;;  %s1301_s12 = sphi %s1393_s12, %s1889_s12  }
  0x13   : > { %1841 = sst [smem:[#allocation13_spill]] %s1305_s13  ;;  %s815_s29 = sadd.s32 4294967294, %s1361_s27  }
  0x14   : > { %1842 = sst [smem:[#allocation14_spill]] %s1317_s16  ;;  %s37_s30 = sadd.s32 1, %s1349_s24 }
  0x15   : > { %1843 = sst [smem:[#allocation15_spill]] %s1321_s17  ;;  %s40_s4 = sadd.s32 1, %s1353_s25 }
  0x16   : > { %1844 = sst [smem:[#allocation16_spill]] %s1337_s21  ;;  %p38_p0 = scmp.ge.s32.totalorder %s37_s30, 2 }
  0x17   : > { %1845 = sst [smem:[#allocation17_spill]] %s1341_s22  ;;  %p67_p1 = scmp.eq.s32.totalorder %s1361_s27, 0 }
  0x18   : > { %1846 = sst [smem:[#allocation18_spill]] %s1345_s23  ;;  %p1825_p2 = scmp.eq.s32.totalorder %s1474_s28, 0 }
  0x19   : > { %1847 = sst [smem:[#allocation19_spill]] %s1474_s28  ;;  %s89_s5 = sadd.s32 1, %s1321_s17 }
  0x1a   : > { %s1910_s30 = smov (%p38_p0, %s37_s30), 0  ;;  %s1912_s4 = smov (!%p38_p0, %s40_s4), %s1353_s25 }
  0x1b   : > { %1848 = sst [smem:[#allocation20_spill]] %s1910_s30  ;;  %s1489_s6 = ssub.s32 %s1349_s24, %s1910_s30 }
  0x1c   : > { %p96_p3 = scmp.ne.s32.totalorder %s1321_s17, %s1317_s16  ;;  %p42_p4 = scmp.ge.s32.totalorder %s1912_s4, 3 }
  0x1d   : > { %p102_p5 = scmp.ne.s32.totalorder %s1317_s16, %s1313_s15  ;;  %p157_p7 = scmp.ne.s32.totalorder %s1309_s14, %s1305_s13 }
  0x1e   : > { %p1498_p6 = por %p96_p3, %p67_p1  ;;  %p158_p9 = scmp.eq.s32.totalorder %s1474_s28, 17 }
  0x1f   : > { %s1507_s8 = scalar_select %p42_p4, 0, %s1912_s4  }
  0x20   : > { %p1511_p8 = por %p102_p5, %p1825_p2  ;;  %p163_p10 = scmp.ne.s32.totalorder %s1305_s13, %s1301_s12 }
  0x21   : > { %1850 = sst [smem:[#allocation21_spill]] %s1507_s8  ;;  %s1518_s10 = ssub.s32 %s1353_s25, %s1507_s8 }
  0x22   : > { %s1851_s9 = scalar_select %p1511_p8, 1, 0 }
  0x23   : > { %s84_s11 = sor.u32 %s1489_s6, %s1518_s10  ;;  %p1524_p11 = por %p158_p9, %p157_p7 }
  0x24   : > { %1852 = sst [smem:[#allocation22_spill]] %s1851_s9  ;;  %p87_p12 = scmp.eq.s32.totalorder %s84_s11, 0 }
  0x25   : > { %s1853_s15 = scalar_select %p1524_p11, 1, 0 }
  0x26   : > { %p164_p13 = scmp.eq.s32.totalorder %s815_s29, 17  ;;  %p1824_p0 = scmp.lt.s32.totalorder %s1361_s27, 18 }
  0x27   : > { %1854 = sst [smem:[#allocation23_spill]] %s1853_s15  ;;  %s209_s8 = sand.u32 1, %s1361_s27  }
  0x28   : > { %s1530_s30 = scalar_select %p87_p12, %s1321_s17, %s89_s5  }
  0x29   : > { %p1532_p3 = por %p164_p13, %p163_p10  ;;  %s211_s23 = sand.u32 1, %s1321_s17  }
  0x2a   : > { %1855 = sst [smem:[#allocation24_spill]] %s1530_s30  ;;  %s822_s21 = sshll.u32 %s211_s23, 6 }
  0x2b   : > { %s1856_s3 = scalar_select %p1532_p3, 1, 0 }
  0x2c   : > { %s823_s12 = sshll.u32 %s1349_s24, 4  ;;  %s824_s22 = sshll.u32 %s1353_s25, 5 }
  0x2d   : > { %1857 = sst [smem:[#allocation25_spill]] %s1856_s3  ;;  %s220_s13 = sadd.s32 %s824_s22, %s823_s12 }
  0x2e   : > { %s213_s9 = scalar_lea.vmem [#allocation5], %s822_s21  ;;  %s825_s15 = sshll.u32 %s220_s13, 6 }
  0x2f   : > { %s223_s16 = sshll.u32 %s213_s9, 4  ;;  %s1858_s1 = sld [smem:[#allocation28_spill]]  ;;  %s224_s16 = int_to_ptr.vmem [resolvable:$true] %s223_s16 }
  0x30   : > { %p1547_p5 = pnand %p1824_p0, %p1498_p6  ;;  %s1860_s2 = sld [smem:[#allocation29_spill]] }
  0x31   : > { %s237_s22 = scalar_lea.vmem [#allocation7], %s822_s21  ;;  %s1556_s23 = scalar_lea.sflag [#allocation6], %s209_s8 }
  0x32   : > { %s247_s13 = sshll.u32 %s237_s22, 4  ;;  %p1834_p7 = pneg %p1547_p5  ;;  %s1569_s13 = int_to_ptr.vmem [resolvable:$true] %s247_s13 }
  0x33   : > { %s1126_s0 = scalar_lea.vmem %s224_s16, 1024  ;;  %s1363_s7 = smov [#allocation5]  }
  0x34   : > { %p1127_p9 = scmp.ne.s32.totalorder %s224_s16, %s1126_s0  ;;  %s1131_s9 = sshll.u32 %s1363_s7, 4  ;;  %s1132_s9 = int_to_ptr.vmem [resolvable:$false] %s1131_s9 }
  0x35   : > { %s222_s29 = scalar_lea.hbm %s1858_s1, %s825_s15  ;;  %s1133_s17 = scalar_lea.vmem %s1132_s9, 2048 }
  0x36   : > { %s1554_s12 = scalar_lea.hbm %s1860_s2, %s825_s15  ;;  %p1129_p6 = pnand %p1127_p9, %p1834_p7 }
  0x37   : > { %p1134_p12 = scmp.lt.s32.totalorder %s224_s16, %s1132_s9  ;;  %p1135_p13 = scmp.lt.s32.totalorder %s1133_s17, %s1126_s0 }
  0x38   : > { %p1130_p10 = pneg %p1129_p6 }
  0x39   : > { %p1136_p0 = por %p1135_p13, %p1134_p12 }
  0x3b   : > { %p1137_p2 = pnand %p1136_p0, %p1130_p10 }
  0x3d   : > { %1140 = shalt.err (!%p1137_p2)
}
  0x3e   : > { %s1826_s21 = smov 64   ;;  %s1828_s30 = smov 4  }
  0x3f   : > { %949 = dma.hbm_to_vmem [thread:$0]  (!%p1547_p5), %s222_s29, 1024, %s224_s16, %s1556_s23, %s1826_s21, %s1826_s21, %s1828_s30  }
  0x40   : > { %p830_p2 = scmp.ge.s32.totalorder %s1361_s27, 1  ;;  %p255_p0 = scmp.lt.s32.totalorder %s1361_s27, 19 }
  0x41   : > { %s48_s15 = sadd.s32 1, %s1357_s26  ;;  %s59_s11 = sadd.s32 1, %s1333_s20 }
  0x42   : > { %p1573_p9 = pnand %p830_p2, %p255_p0  ;;  %s1914_s15 = smov (!%p42_p4, %s48_s15), %s1357_s26 }
  0x43   : > { %p66_p6 = scmp.ne.s32.totalorder %s1333_s20, %s1329_s19  ;;  %p72_p10 = scmp.ne.s32.totalorder %s1329_s19, %s1325_s18 }
  0x44   : > { %p50_p12 = scmp.ge.s32.totalorder %s1914_s15, 3  ;;  %s147_s16 = sadd.s32 1, %s1309_s14 }
  0x45   : > { %p1589_p13 = por %p67_p1, %p66_p6  ;;  %p1863_p2 = scmp.eq.s32.totalorder %s1474_s28, 0 }
  0x46   : > { %s1916_s15 = smov (%p50_p12, %s1914_s15), 0  ;;  %s184_s18 = sand.u32 1, %s1333_s20  }
  0x47   : > { %p1595_p0 = por %p1863_p2, %p72_p10  ;;  %s860_s4 = sshll.u32 %s1357_s26, 4 }
  0x48   : > { %s53_s0 = ssub.s32 %s1357_s26, %s1916_s15  ;;  %s818_s17 = sshll.u32 %s184_s18, 5 }
  0x49   : > { %s1864_s22 = scalar_select %p1595_p0, 1, 0 }
  0x4a   : > { %s54_s7 = sor.u32 %s53_s0, %s1518_s10  ;;  %p145_p4 = scmp.eq.s32.totalorder %s53_s0, 0 }
  0x4b   : > { %1865 = sst [smem:[#allocation26_spill]] %s1864_s22  ;;  %s56_s9 = sor.u32 %s1489_s6, %s54_s7 }
  0x4c   : > { %p57_p1 = scmp.eq.s32.totalorder %s56_s9, 0  ;;  %s194_s1 = sadd.s32 %s1349_s24, %s860_s4 }
  0x4d   : > { %s1608_s21 = scalar_select %p145_p4, %s1309_s14, %s147_s16  }
  0x4e   : > { %s1611_s30 = scalar_select %p57_p1, %s1333_s20, %s59_s11  }
  0x4f   : > { %s934_s2 = smul.u32 48, %s1353_s25  ;;  %s188_s3 = scalar_lea.vmem [#allocation2], %s818_s17 }
  0x50   : > { %s199_s28 = sshll.u32 %s188_s3, 4  ;;  %p1866_p6 = scmp.lt.s32.totalorder %s1361_s27, 18  ;;  %s200_s28 = int_to_ptr.vmem [resolvable:$true] %s199_s28 }
  0x51   : > { %s196_s10 = sadd.s32 %s934_s2, %s194_s1  ;;  %s1868_s16 = sld [smem:[#allocation27_spill]] }
  0x52   : > { %p1619_p10 = pnand %p1866_p6, %p1589_p13  ;;  %s821_s6 = sshll.u32 %s196_s10, 6 }
  0x53   : > { %s185_s11 = scalar_lea.sflag [#allocation3], %s184_s18  ;;  %s1154_s4 = scalar_lea.vmem %s200_s28, 512 }
  0x54   : > { %p1143_p12 = pneg %p1619_p10  ;;  %p1155_p2 = scmp.ne.s32.totalorder %s200_s28, %s1154_s4 }
  0x55   : > { %s1366_s3 = smov [#allocation2]  }
  0x56   : > { %p1157_p4 = pnand %p1155_p2, %p1143_p12  ;;  %s1159_s29 = sshll.u32 %s1366_s3, 4  ;;  %s1160_s29 = int_to_ptr.vmem [resolvable:$false] %s1159_s29 }
  0x57   : > { %s198_s9 = scalar_lea.hbm %s1868_s16, %s821_s6  ;;  %s1161_s17 = scalar_lea.vmem %s1160_s29, 1024 }
  0x58   : > { %p1158_p1 = pneg %p1157_p4  ;;  %p1162_p13 = scmp.lt.s32.totalorder %s200_s28, %s1160_s29 }
  0x59   : > { %p1163_p6 = scmp.lt.s32.totalorder %s1161_s17, %s1154_s4 }
  0x5b   : > { %p1164_p7 = por %p1163_p6, %p1162_p13 }
  0x5d   : > { %p1165_p3 = pnand %p1164_p7, %p1158_p1 }
  0x5f   : > { %1168 = shalt.err (!%p1165_p3)
}
  0x60   : > { %s1367_s1 = smov 128   ;;  %s1869_s2 = smov 4  }
  0x61   : > { %s1870_s18 = smov 64   ;;  %s1182_s10 = scalar_lea.vmem %s1569_s13, 1024 }
  0x62   : > { %946 = dma.hbm_to_vmem [thread:$0]  (!%p1619_p10), %s198_s9, 512, %s200_s28, %s185_s11, %s1367_s1, %s1870_s18, %s1869_s2  }
  0x63   : > { %p1183_p12 = scmp.ne.s32.totalorder %s1569_s13, %s1182_s10  ;;  %p1871_p2 = pneg %p1547_p5 }
  0x64   : > { %s1368_s6 = smov [#allocation7]  }
  0x65   : > { %p1185_p4 = pnand %p1183_p12, %p1871_p2  ;;  %s1187_s0 = sshll.u32 %s1368_s6, 4  ;;  %s1188_s0 = int_to_ptr.vmem [resolvable:$false] %s1187_s0 }
  0x66   : > { %s1189_s7 = scalar_lea.vmem %s1188_s0, 2048  ;;  %p1190_p3 = scmp.lt.s32.totalorder %s1569_s13, %s1188_s0 }
  0x67   : > { %p1186_p11 = pneg %p1185_p4  ;;  %p1191_p7 = scmp.lt.s32.totalorder %s1189_s7, %s1182_s10 }
  0x69   : > { %p1192_p1 = por %p1191_p7, %p1190_p3 }
  0x6b   : > { %p1193_p13 = pnand %p1192_p1, %p1186_p11 }
  0x6d   : > { %1196 = shalt.err (!%p1193_p13)
}
  0x6e   : > { %952 = dma.hbm_to_vmem [thread:$0]  (!%p1547_p5), %s1554_s12, 1024, %s1569_s13, %s1556_s23, %s1870_s18, %s1870_s18, %s1869_s2  }
  0x6f   : > { %259 = sbr.rel (%p1573_p9) target bundleno = 409 (0x199), region = 32  ;;  %s261_s22 = sand.u32 (!%p1573_p9), 1, %s1329_s19  }
  0x70   : > { %s831_s16 = sshll.u32 (!%p1573_p9), %s261_s22, 5  ;;  %s262_s9 = scalar_lea.sflag (!%p1573_p9), [#allocation3], %s261_s22 }
  0x71   : > { %s1649_s11 = scalar_lea.vmem (!%p1573_p9), [#allocation2], %s831_s16 }
  0x74   : > { %1288 = dma.done.wait (%p1595_p0), %s262_s9, 512  }
  0x75   : > { %1290 = vsyncadd (%p1595_p0), %s262_s9, 4294966784  ;;  %s1873_s5 = sld [smem:[#allocation19_spill]] }
  0x76   : > { %s1874_s4 = sld [smem:[#allocation14_spill]] }
  0x7b   : > { %s270_s29 = sand.u32 1, %s1873_s5  }
  0x7c   : > { %s272_s12 = sand.u32 1, %s1874_s4   ;;  %s271_s23 = scalar_lea.sflag [#allocation6], %s270_s29 }
  0x7d   : > { %s832_s13 = sshll.u32 %s272_s12, 6 }
  0x7e   : > { %s1657_s8 = scalar_lea.vmem [#allocation5], %s832_s13 }
  0x7f   : > { %1292 = dma.done.wait (%p1511_p8), %s271_s23, 2048  }
  0x80   : > { %1294 = vsyncadd (%p1511_p8), %s271_s23, 4294965248  ;;  %s1876_s17 = sld [smem:[#allocation13_spill]]  ;;  %s1668_s6 = scalar_lea.vmem [#allocation7], %s832_s13 }
  0x81   : > { %s1877_s1 = sld [smem:[#allocation17_spill]] }
  0x82   : > { %s1878_s2 = sld [smem:[#allocation16_spill]] }
  0x86   : > { %s313_s18 = sand.u32 1, %s1876_s17  }
  0x87   : > { %s834_s10 = sshll.u32 %s313_s18, 6  ;;  %p321_p11 = scmp.eq.s32.totalorder %s1877_s1, 0 }
  0x88   : > { %p322_p5 = scmp.eq.s32.totalorder %s1878_s2, 0  ;;  %s1670_s0 = scalar_lea.vmem [#allocation8], %s834_s10 }
  0x8a   : > { %p323_p9 = pnand %p322_p5, %p321_p11 }
  0x8c   : > { %326 = sbr.rel (%p323_p9) target bundleno = 150 (0x96), region = 48 }
  0x91   : > { %v1369_v0 = vmov 0.0  }
  0x92   : > { %327 = vst [vmem:[%s1670_s0] sm:$0xff] %v1369_v0  ;;  %328 = vst [vmem:[%s1670_s0 + $0x8] sm:$0xff] %v1369_v0 }
  0x93   : > { %329 = vst [vmem:[%s1670_s0 + $0x10] sm:$0xff] %v1369_v0  ;;  %330 = vst [vmem:[%s1670_s0 + $0x18] sm:$0xff] %v1369_v0 }
  0x94   : > { %331 = vst [vmem:[%s1670_s0 + $0x20] sm:$0xff] %v1369_v0  ;;  %332 = vst [vmem:[%s1670_s0 + $0x28] sm:$0xff] %v1369_v0 }
  0x95   : > { %333 = vst [vmem:[%s1670_s0 + $0x30] sm:$0xff] %v1369_v0  ;;  %334 = vst [vmem:[%s1670_s0 + $0x38] sm:$0xff] %v1369_v0 }
  0x96 PF: > { %v1093_v1 = vld [vmem:[%s1668_s6 + $0x38] sm:$0xff]   ;;  %v1095_v3 = vld [vmem:[%s1668_s6 + $0x30] sm:$0xff]   ;;  %v1097_v5 = vld [vmem:[%s1668_s6 + $0x28] sm:$0xff]   ;;  %s1879_s7 = sld [smem:[#allocation18_spill]]  ;;  %s664_s9 = sshll.u32 %s1670_s0, 4  ;;  %s1721_s9 = int_to_ptr.vmem [resolvable:$true] %s664_s9 }
  0x97   : > { %v1094_v2 = vld [vmem:[%s1657_s8 + $0x38] sm:$0xff]   ;;  %886 = vmatprep.subr.bf16.mxu0 %v1093_v1  ;;  %v1096_v4 = vld [vmem:[%s1657_s8 + $0x30] sm:$0xff]   ;;  %v1098_v6 = vld [vmem:[%s1657_s8 + $0x28] sm:$0xff]   ;;  %s1881_s22 = sld [smem:[#allocation23_spill]]  ;;  %s1727_s29 = scalar_lea.sflag [#allocation4], %s313_s18 }
  0x98   : > { %910 = vmatprep.subr.bf16.mxu1 %v1094_v2  ;;  %887 = vmatpush3.bf16.msra.mxu0 %v1093_v1  ;;  %v1099_v7 = vld [vmem:[%s1668_s6 + $0x20] sm:$0xff]   ;;  %v1101_v9 = vld [vmem:[%s1668_s6 + $0x18] sm:$0xff]   ;;  %v1103_v11 = vld [vmem:[%s1668_s6 + $0x10] sm:$0xff]   ;;  %s1882_s4 = sld [smem:[#allocation30_spill]]  ;;  %s1197_s12 = scalar_lea.vmem %s1721_s9, 1024 }
  0x99   : > { %911 = vmatpush3.bf16.msra.mxu1 %v1094_v2  ;;  %888 = vmatprep.subr.bf16.mxu0 %v1095_v3  ;;  %v1100_v8 = vld [vmem:[%s1657_s8 + $0x20] sm:$0xff]   ;;  %v1102_v10 = vld [vmem:[%s1657_s8 + $0x18] sm:$0xff]   ;;  %v1104_v13 = vld [vmem:[%s1657_s8 + $0x10] sm:$0xff]   ;;  %p1198_p8 = scmp.ne.s32.totalorder %s1721_s9, %s1197_s12  ;;  %s1370_s13 = smov [#allocation8]  }
  0x9a   : > { %912 = vmatprep.subr.bf16.mxu1 %v1096_v4  ;;  %v1109_v12 = vld [vmem:[%s1649_s11] sm:$0xff]   ;;  %v1105_v14 = vld [vmem:[%s1668_s6 + $0x8] sm:$0xff]   ;;  %v1111_v19 = vld [vmem:[%s1649_s11 + $0x10] sm:$0xff]   ;;  %s1201_s23 = sshll.u32 %s1370_s13, 4  ;;  %s1202_s23 = int_to_ptr.vmem [resolvable:$false] %s1201_s23 }
  0x9b   : > { %902 = vmatprep.mubr.bf16.mxu0 %v1109_v12  ;;  %926 = vmatprep.mubr.bf16.mxu1 %v1109_v12  ;;  %v1106_v15 = vld [vmem:[%s1657_s8 + $0x8] sm:$0xff]   ;;  %v1107_v16 = vld [vmem:[%s1668_s6] sm:$0xff]   ;;  %v1112_v20 = vld [vmem:[%s1649_s11 + $0x18] sm:$0xff]   ;;  %p1204_p12 = scmp.lt.s32.totalorder %s1721_s9, %s1202_s23 }
  0x9c   : > { %889 = vmatpush3.bf16.msra.mxu0 %v1095_v3  ;;  %v1108_v17 = vld [vmem:[%s1657_s8] sm:$0xff]   ;;  %v1110_v18 = vld [vmem:[%s1649_s11 + $0x8] sm:$0xff]   ;;  %v627_v23 = vld [vmem:[%s1670_s0 + $0x10] sm:$0xff]  ;;  %s861_s16 = sshll.u32 %s1879_s7, 10  ;;  %s1203_s8 = scalar_lea.vmem %s1202_s23, 2048 }
  0x9d   : > { %913 = vmatpush3.bf16.msra.mxu1 %v1096_v4  ;;  %890 = vmatprep.subr.bf16.mxu0 %v1097_v5  ;;  %v625_v27 = vld [vmem:[%s1670_s0] sm:$0xff]  ;;  %v628_v32 = vld [vmem:[%s1670_s0 + $0x18] sm:$0xff]  ;;  %v626_v37 = vld [vmem:[%s1670_s0 + $0x8] sm:$0xff]  ;;  %p1883_p0 = scmp.ne.s32.totalorder %s1881_s22, 0  ;;  %p1205_p2 = scmp.lt.s32.totalorder %s1203_s8, %s1197_s12 }
  0x9e   : > { %914 = vmatprep.subr.bf16.mxu1 %v1098_v6  ;;  %v631_v42 = vld [vmem:[%s1670_s0 + $0x30] sm:$0xff]  ;;  %v629_v47 = vld [vmem:[%s1670_s0 + $0x20] sm:$0xff]  ;;  %v632_v52 = vld [vmem:[%s1670_s0 + $0x38] sm:$0xff]  ;;  %s1719_s3 = scalar_lea.hbm %s1882_s4, %s861_s16 }
  0x9f   : > { %v630_v57 = vld [vmem:[%s1670_s0 + $0x28] sm:$0xff]  ;;  %p1199_p10 = pnand %p1198_p8, %p1883_p0  ;;  %p1206_p4 = por %p1205_p2, %p1204_p12 }
  0xa0   : > { %891 = vmatpush3.bf16.msra.mxu0 %v1097_v5 }
  0xa1   : > { %915 = vmatpush3.bf16.msra.mxu1 %v1098_v6  ;;  %892 = vmatprep.subr.bf16.mxu0 %v1099_v7  ;;  %p1200_p6 = pneg %p1199_p10 }
  0xa2   : > { %916 = vmatprep.subr.bf16.mxu1 %v1100_v8 }
  0xa3   : > { %p1207_p3 = pnand %p1206_p4, %p1200_p6 }
  0xa4   : > { %893 = vmatpush3.bf16.msra.mxu0 %v1099_v7 }
  0xa5   : > { %917 = vmatpush3.bf16.msra.mxu1 %v1100_v8  ;;  %894 = vmatprep.subr.bf16.mxu0 %v1101_v9 }
  0xa6   : > { %918 = vmatprep.subr.bf16.mxu1 %v1102_v10 }
  0xa8   : > { %895 = vmatpush3.bf16.msra.mxu0 %v1101_v9 }
  0xa9   : > { %919 = vmatpush3.bf16.msra.mxu1 %v1102_v10  ;;  %896 = vmatprep.subr.bf16.mxu0 %v1103_v11 }
  0xaa   : > { %920 = vmatprep.subr.bf16.mxu1 %v1104_v13 }
  0xac   : > { %897 = vmatpush3.bf16.msra.mxu0 %v1103_v11 }
  0xad   : > { %921 = vmatpush3.bf16.msra.mxu1 %v1104_v13  ;;  %898 = vmatprep.subr.bf16.mxu0 %v1105_v14 }
  0xae   : > { %922 = vmatprep.subr.bf16.mxu1 %v1106_v15 }
  0xb0   : > { %899 = vmatpush3.bf16.msra.mxu0 %v1105_v14 }
  0xb1   : > { %923 = vmatpush3.bf16.msra.mxu1 %v1106_v15  ;;  %900 = vmatprep.subr.bf16.mxu0 %v1107_v16 }
  0xb2   : > { %924 = vmatprep.subr.bf16.mxu1 %v1108_v17 }
  0xb4   : > { %901 = vmatpush3.bf16.msra.mxu0 %v1107_v16 }
  0xb5   : > { %925 = vmatpush3.bf16.msra.mxu1 %v1108_v17 }
  0xb7   : > { %903 = vmatmul.mubr.bf16.vlgmr.msra.gmra.mxu0 %v1110_v18 }
  0xb8   : > { %927 = vmatmul.mubr.bf16.vlgmr.msra.gmra.mxu1 %v1110_v18  ;;  %906 = vmatprep.mubr.bf16.mxu0 %v1111_v19 }
  0xb9   : > { %930 = vmatprep.mubr.bf16.mxu1 %v1111_v19 }
  0xbf   : > { %907 = vmatmul.mubr.bf16.gmra.mxu0 %v1112_v20 }
  0xc0   : > { %931 = vmatmul.mubr.bf16.gmra.mxu1 %v1112_v20 }
 0x177   : > { %v904_v21 = vpop.f32.mrf.mxu0 }
 0x178   : > { %v928_v22 = vpop.f32.mrf.mxu1 }
 0x179   : > { %v603_v24 = vadd.f32 %v928_v22, %v904_v21  ;;  %v481_v25 = vpop.f32.mrf.mxu0 }
 0x17a   : > { %v594_v26 = vpop.f32.mrf.mxu1 }
 0x17b   : > { %v635_v28 = vadd.f32 %v627_v23, %v603_v24  ;;  %v595_v29 = vadd.f32 %v594_v26, %v481_v25  ;;  %v905_v30 = vpop.f32.mrf.mxu0 }
 0x17c   : > { %v929_v31 = vpop.f32.mrf.mxu1 }
 0x17d   : > { %643 = vst [vmem:[%s1670_s0 + $0x10] sm:$0xff] %v635_v28  ;;  %v633_v33 = vadd.f32 %v625_v27, %v595_v29  ;;  %v606_v34 = vadd.f32 %v929_v31, %v905_v30  ;;  %v484_v35 = vpop.f32.mrf.mxu0 }
 0x17e   : > { %v597_v36 = vpop.f32.mrf.mxu1 }
 0x17f   : > { %641 = vst [vmem:[%s1670_s0] sm:$0xff] %v633_v33  ;;  %v636_v38 = vadd.f32 %v628_v32, %v606_v34  ;;  %v598_v39 = vadd.f32 %v597_v36, %v484_v35  ;;  %v908_v40 = vpop.f32.mrf.mxu0 }
 0x180   : > { %v932_v41 = vpop.f32.mrf.mxu1 }
 0x181   : > { %644 = vst [vmem:[%s1670_s0 + $0x18] sm:$0xff] %v636_v38  ;;  %v634_v43 = vadd.f32 %v626_v37, %v598_v39  ;;  %v619_v44 = vadd.f32 %v932_v41, %v908_v40  ;;  %v497_v45 = vpop.f32.mrf.mxu0 }
 0x182   : > { %v610_v46 = vpop.f32.mrf.mxu1 }
 0x183   : > { %642 = vst [vmem:[%s1670_s0 + $0x8] sm:$0xff] %v634_v43  ;;  %v639_v48 = vadd.f32 %v631_v42, %v619_v44  ;;  %v611_v49 = vadd.f32 %v610_v46, %v497_v45  ;;  %v909_v50 = vpop.f32.mrf.mxu0 }
 0x184   : > { %v933_v51 = vpop.f32.mrf.mxu1 }
 0x185   : > { %647 = vst [vmem:[%s1670_s0 + $0x30] sm:$0xff] %v639_v48  ;;  %v637_v53 = vadd.f32 %v629_v47, %v611_v49  ;;  %v622_v54 = vadd.f32 %v933_v51, %v909_v50  ;;  %v500_v55 = vpop.f32.mrf.mxu0 }
 0x186   : > { %v613_v56 = vpop.f32.mrf.mxu1 }
 0x187   : > { %645 = vst [vmem:[%s1670_s0 + $0x20] sm:$0xff] %v637_v53  ;;  %v640_v58 = vadd.f32 %v632_v52, %v622_v54  ;;  %v614_v59 = vadd.f32 %v613_v56, %v500_v55 }
 0x189   : > { %648 = vst [vmem:[%s1670_s0 + $0x38] sm:$0xff] %v640_v58  ;;  %v638_v60 = vadd.f32 %v630_v57, %v614_v59 }
 0x18b   : > { %646 = vst [vmem:[%s1670_s0 + $0x28] sm:$0xff] %v638_v60 }
 0x18c   : > { %1210 = shalt.err (!%p1207_p3)
}
 0x18d   : > { %s1211_s17 = scalar_lea.hbm %s1719_s3, 1024  ;;  %s1215_s18 = scalar_lea.hbm %s1882_s4, 3072 }
 0x18e   : > { %p1212_p7 = scmp.ne.s32.totalorder %s1719_s3, %s1211_s17  ;;  %p1216_p11 = scmp.lt.s32.totalorder %s1719_s3, %s1882_s4 }
 0x18f   : > { %p1217_p5 = scmp.lt.s32.totalorder %s1215_s18, %s1211_s17 }
 0x190   : > { %p1213_p1 = pnand %p1212_p7, %p1883_p0 }
 0x191   : > { %p1218_p9 = por %p1217_p5, %p1216_p11 }
 0x192   : > { %p1214_p13 = pneg %p1213_p1 }
 0x194   : > { %p1219_p8 = pnand %p1218_p9, %p1214_p13 }
 0x196   : > { %1222 = shalt.err (!%p1219_p8)
}
 0x197   : > { %s1371_s0 = smov 128   ;;  %s1372_s7 = smov 8  }
 0x198   : > { %941 = dma.vmem_to_hbm [thread:$0]  (%p1883_p0), %s1721_s9, 1024, %s1719_s3, %s1727_s29, %s1371_s0, %s1371_s0, %s1372_s7  }
 0x199 PF: > { %s1884_s28 = sld [smem:[#allocation12_spill]]  ;;  %p958_p10 = scmp.ge.s32.totalorder %s1361_s27, 2 }
 0x19a   : > { %s1885_s16 = sld [smem:[#allocation25_spill]] }
 0x19f   : > { %s679_s11 = sand.u32 1, %s1884_s28  }
 0x1a0   : > { %p1886_p6 = scmp.ne.s32.totalorder %s1885_s16, 0  ;;  %s680_s5 = scalar_lea.sflag [#allocation4], %s679_s11 }
 0x1a2   : > { %p954_p12 = pnand %p958_p10, %p1886_p6 }
 0x1a4   : > { %p955_p2 = pneg %p954_p12 }
 0x1a6   : > { %1296 = dma.done.wait (%p955_p2), %s680_s5, 1024  }
 0x1a7   : > { %1298 = vsyncadd (%p955_p2), %s680_s5, 4294966272  ;;  %s22_s27 = sadd.s32 1, %s1361_s27   ;;  %s1889_s12 = sld [smem:[#allocation13_spill]] }
 0x1a8   : > { %p1755_p4 = scmp.ge.s32.totalorder %s22_s27, 20   ;;  %s1890_s22 = sld [smem:[#allocation14_spill]] }
 0x1a9   : > { %s1891_s16 = sld [smem:[#allocation15_spill]]  ;;  %s1895_s29 = smov %s1916_s15 }
 0x1aa   : > { %s1892_s17 = sld [smem:[#allocation24_spill]]  ;;  %s1897_s13 = smov %s1309_s14 }
 0x1ab   : > { %s1893_s9 = sld [smem:[#allocation20_spill]]  ;;  %s1898_s14 = smov %s1608_s21 }
 0x1ac   : > { %s1894_s3 = sld [smem:[#allocation21_spill]]  ;;  %s1900_s18 = smov %s1329_s19 }
 0x1ad   : > { %s1901_s19 = smov %s1333_s20  ;;  %s1902_s20 = smov %s1611_s30 }
 0x1ae   : > { %s1899_s15 = smov %s1890_s22  ;;  %s1903_s21 = smov %s1349_s24 }
 0x1af   : > { %s1904_s22 = smov %s1353_s25  ;;  %s1905_s23 = smov %s1357_s26 }
 0x1b0   : > { %s1908_s26 = smov %s1895_s29  ;;  %21 = sbr.rel (!%p1755_p4) target bundleno = 18 (0x12), region = 105 }
 0x1b1   : > { %s1906_s24 = smov %s1893_s9 }
 0x1b2   : > { %s1907_s25 = smov %s1894_s3 }
 0x1b5   :  { %685 = vsyncpa [#allocation3], 1 }
 0x1b6   :  { %687 = vsyncpa [#allocation3 + $0x1], 1 }
 0x1b7   :  { %688 = vsyncpa [#allocation6], 1 }
 0x1b8   :  { %690 = vsyncpa [#allocation6 + $0x1], 1 }
 0x1b9   :  { %691 = vsyncpa [#allocation4], 1 }
 0x1ba   :  { %693 = vsyncpa [#allocation4 + $0x1], 1 }

</bundles_post_ra>
